<compile_context>
chip_gen: v5e
topology: v5e:2x2
jax: 0.10.0
libtpu: 0.0.40
codegen_flags: <defaults>
</compile_context>

<pallas_src>
import jax
import jax.numpy as jnp
from jax.experimental import pallas as pl
from jax.experimental.pallas import tpu as pltpu

model_config = dict(measure_dim=16, embedd_dim=32, ffn_dim=64, num_labels=4)
hyperparams = dict(max_seq_len=8)
BN_EPS = 1e-5


def convconvconv_kernel(
    x_ref,              # (b_blk, L*Dm) bf16, lane-dense
    we_ref, b0_ref,     # embedding conv + BN0 (block-diag): (L*Dm, L*De) bf16, (1, L*De) f32
    w1_ref, b1_ref,     # block1 conv   + BN1 (block-diag): (L*De, 2*L*De) bf16, (1, 2*L*De) f32
    w2_ref, b2_ref,     # block2 conv   + BN2 (block-diag): (2*L*De, L*De) bf16, (1, L*De) f32
    wl1_ref, bl1_ref,   # AvgPool folded into linear1 + BN3: (L*De, Df) bf16, (1, Df) f32
    wl2_ref, bl2_ref,   # linear2: (Df, Nl) bf16, (1, Nl) f32
    out_ref,            # (b_blk, Nl) f32
):
    f32, bf16 = jnp.float32, jnp.bfloat16
    x = x_ref[...]                                               # (b_blk, 128) bf16

    # embedding: Conv1d(k=1) + BN0 (folded, block-diagonal over the L positions)
    e = jnp.dot(x, we_ref[...], preferred_element_type=f32) + b0_ref[...]      # (b, L*De)

    # block1: Conv1d(k=1) + BN1 + ReLU
    h = jnp.maximum(
        jnp.dot(e.astype(bf16), w1_ref[...], preferred_element_type=f32)
        + b1_ref[...], 0.0)                                                     # (b, 2*L*De)

    # block2: Conv1d(k=1) + BN2 + ReLU, residual with embedding output
    g = jnp.maximum(
        jnp.dot(h.astype(bf16), w2_ref[...], preferred_element_type=f32)
        + b2_ref[...], 0.0) + e                                                 # (b, L*De)

    # AvgPool1d(L) folded into linear1 (+ BN3 + ReLU)
    l1 = jnp.maximum(
        jnp.dot(g.astype(bf16), wl1_ref[...], preferred_element_type=f32)
        + bl1_ref[...], 0.0)                                                    # (b, Df)

    # linear2 head
    out_ref[...] = (jnp.dot(l1.astype(bf16), wl2_ref[...],
                            preferred_element_type=f32) + bl2_ref[...])         # (b, Nl)


def _choose_block_b(B, target=1024, min_grid=2):
    """Row-block size: multiple of 8, at most `target`, and (when B allows) small
    enough to give >= min_grid grid steps so v7x's two TensorCores both get work."""
    b = max(8, min(target, pl.cdiv(B, min_grid)))
    return ((b + 7) // 8) * 8


def convconvconv(x, params, *, block_b=None):
    """x: (B, L, measure_dim) float32 -> (B, num_labels) float32."""
    B, L, Dm = x.shape
    Nl = model_config['num_labels']

    # Lane-dense 2-D bf16 input: halves the x HBM read, contiguous (b_blk, 128) DMA.
    x2 = x.reshape(B, L * Dm).astype(jnp.bfloat16)

    b_blk = _choose_block_b(B) if block_b is None else block_b
    B_pad = pl.cdiv(B, b_blk) * b_blk
    if B_pad != B:
        # Handle non-divisible / small B by zero-padding rows (sliced off below).
        x2 = jnp.pad(x2, ((0, B_pad - B), (0, 0)))
    grid = (B_pad // b_blk,)

    x_spec = pl.BlockSpec((b_blk, L * Dm), lambda i: (i, 0))
    # Weights/biases: whole-array blocks with constant index_maps -> DMA'd once,
    # VMEM-resident across the row grid.
    w_specs = [pl.BlockSpec(p.shape, lambda i: (0, 0)) for p in params]
    out_spec = pl.BlockSpec((b_blk, Nl), lambda i: (i, 0))

    # Advisory cost estimate for XLA's scheduler around the custom call.
    flops = 2 * B_pad * sum(int(params[j].shape[0]) * int(params[j].shape[1])
                            for j in (0, 2, 4, 6, 8))
    bytes_accessed = int(x2.size) * x2.dtype.itemsize \
        + sum(int(p.size) * p.dtype.itemsize for p in params) \
        + B_pad * Nl * 4

    out = pl.pallas_call(
        convconvconv_kernel,
        out_shape=jax.ShapeDtypeStruct((B_pad, Nl), jnp.float32),
        grid=grid,
        in_specs=[x_spec] + w_specs,
        out_specs=out_spec,
        compiler_params=pltpu.CompilerParams(
            dimension_semantics=("parallel",),
            vmem_limit_bytes=32 * 1024 * 1024),
        cost_estimate=pl.CostEstimate(
            flops=flops, transcendentals=0, bytes_accessed=int(bytes_accessed)),
    )(x2, *params)
    return out[:B] if B_pad != B else out


def convconvconv_ref(x, params):
    """Pure-JAX reference with identical math/packing (for correctness check)."""
    we, b0, w1, b1, w2, b2, wl1, bl1, wl2, bl2 = params
    f32, bf16 = jnp.float32, jnp.bfloat16
    B, L, Dm = x.shape
    x2 = x.reshape(B, L * Dm).astype(bf16)
    e = jnp.dot(x2, we, preferred_element_type=f32) + b0
    h = jnp.maximum(jnp.dot(e.astype(bf16), w1, preferred_element_type=f32) + b1, 0.0)
    g = jnp.maximum(jnp.dot(h.astype(bf16), w2, preferred_element_type=f32) + b2, 0.0) + e
    l1 = jnp.maximum(jnp.dot(g.astype(bf16), wl1, preferred_element_type=f32) + bl1, 0.0)
    return jnp.dot(l1.astype(bf16), wl2, preferred_element_type=f32) + bl2


def _bn_fold(gamma, beta, mean, var, eps=BN_EPS):
    scale = gamma / jnp.sqrt(var + eps)
    shift = beta - mean * scale
    return scale, shift


def init_params(key):
    """Random eval-mode parameters, BN-folded and packed batch-in-lanes:
    block-diagonal bf16 conv weights over the L positions, AvgPool folded into
    linear1, f32 biases (1, Cout)."""
    mc = model_config
    Dm, De, Df, Nl = mc['measure_dim'], mc['embedd_dim'], mc['ffn_dim'], mc['num_labels']
    L = hyperparams['max_seq_len']
    ks = iter(jax.random.split(key, 32))

    def w(shape, scale=0.1):
        return scale * jax.random.normal(next(ks), shape, jnp.float32)

    def bn(c):
        gamma = 1.0 + 0.1 * jax.random.normal(next(ks), (c,), jnp.float32)
        beta = 0.05 * jax.random.normal(next(ks), (c,), jnp.float32)
        mean = 0.1 * jax.random.normal(next(ks), (c,), jnp.float32)
        var = 1.0 + 0.2 * jax.random.uniform(next(ks), (c,), jnp.float32)
        return _bn_fold(gamma, beta, mean, var)

    def fold(weight, bias, scale, shift):
        # (x @ W + b) * s + t  ==  x @ (W * s) + (b * s + t)
        return weight * scale[None, :], bias * scale + shift

    def block_diag(wf, n):
        cin, cout = wf.shape
        out = jnp.zeros((n * cin, n * cout), jnp.float32)
        for l in range(n):
            out = out.at[l * cin:(l + 1) * cin, l * cout:(l + 1) * cout].set(wf)
        return out

    # PyTorch Conv1d weight (Cout, Cin, 1) / Linear weight (Cout, Cin) are stored
    # here pre-transposed as (Cin, Cout) for right-multiplication on the MXU.
    we_f, b0_f = fold(w((Dm, De)),     w((De,)),     *bn(De))
    w1_f, b1_f = fold(w((De, 2 * De)), w((2 * De,)), *bn(2 * De))
    w2_f, b2_f = fold(w((2 * De, De)), w((De,)),     *bn(De))
    wl1_f, bl1_f = fold(w((De, Df)),   w((Df,)),     *bn(Df))
    wl2_f, bl2_f = w((Df, Nl)), w((Nl,))            # linear2 has no BN

    # Batch-in-lanes packing: block-diagonal over the L sequence positions;
    # AvgPool folded into linear1 by vertically tiling wl1 scaled by 1/L.
    we_bd = block_diag(we_f, L).astype(jnp.bfloat16)            # (L*Dm, L*De)   = (128, 256)
    w1_bd = block_diag(w1_f, L).astype(jnp.bfloat16)            # (L*De, 2*L*De) = (256, 512)
    w2_bd = block_diag(w2_f, L).astype(jnp.bfloat16)            # (2*L*De, L*De) = (512, 256)
    wl1_p = (jnp.tile(wl1_f, (L, 1)) / L).astype(jnp.bfloat16)  # (L*De, Df)     = (256, 64)
    wl2 = wl2_f.astype(jnp.bfloat16)                            # (Df, Nl)       = (64, 4)

    b0 = jnp.tile(b0_f, L)[None, :].astype(jnp.float32)         # (1, L*De)
    b1 = jnp.tile(b1_f, L)[None, :].astype(jnp.float32)         # (1, 2*L*De)
    b2 = jnp.tile(b2_f, L)[None, :].astype(jnp.float32)         # (1, L*De)
    bl1 = bl1_f[None, :].astype(jnp.float32)                    # (1, Df)
    bl2 = bl2_f[None, :].astype(jnp.float32)                    # (1, Nl)

    return (we_bd, b0, w1_bd, b1, w2_bd, b2, wl1_p, bl1, wl2, bl2)


if __name__ == "__main__":
    B = 2
    L = hyperparams['max_seq_len']
    Dm = model_config['measure_dim']

    key = jax.random.PRNGKey(0)
    kx, kp = jax.random.split(key)
    x = jax.random.normal(kx, (B, L, Dm), dtype=jnp.float32)
    params = init_params(kp)

    out = convconvconv(x, params)
    out = jax.block_until_ready(out)
    assert out.shape == (B, model_config['num_labels'])
    assert out.dtype == jnp.float32

    ref = convconvconv_ref(x, params)
    max_err = float(jnp.max(jnp.abs(out - ref)))
    assert max_err < 1e-2, f"kernel/reference mismatch: max abs err {max_err}"
    print("KERNEL_OK")
</pallas_src>

<mosaic_0001>
module attributes {stable_mosaic.version = 11 : i64} {
  func.func @convconvconv_kernel(%arg0: i32, %arg1: memref<8x128xbf16, #tpu.memory_space<vmem>>, %arg2: memref<128x256xbf16, #tpu.memory_space<vmem>>, %arg3: memref<1x256xf32, #tpu.memory_space<vmem>>, %arg4: memref<256x512xbf16, #tpu.memory_space<vmem>>, %arg5: memref<1x512xf32, #tpu.memory_space<vmem>>, %arg6: memref<512x256xbf16, #tpu.memory_space<vmem>>, %arg7: memref<1x256xf32, #tpu.memory_space<vmem>>, %arg8: memref<256x64xbf16, #tpu.memory_space<vmem>>, %arg9: memref<1x64xf32, #tpu.memory_space<vmem>>, %arg10: memref<64x4xbf16, #tpu.memory_space<vmem>>, %arg11: memref<1x4xf32, #tpu.memory_space<vmem>>, %arg12: memref<8x4xf32, #tpu.memory_space<vmem>>) attributes {dimension_semantics = [#tpu.dimension_semantics<parallel>], iteration_bounds = array<i64: 1>, scalar_prefetch = 0 : i64, scratch_operands = 0 : i64, tpu.core_type = #tpu.core_type<tc>, window_params = [{transform_indices = @transform_0, window_bounds = array<i64: 8, 128>}, {pipeline_mode = #tpu.pipeline_mode<synchronous>, transform_indices = @transform_1, window_bounds = array<i64: 128, 256>}, {pipeline_mode = #tpu.pipeline_mode<synchronous>, transform_indices = @transform_2, window_bounds = array<i64: 1, 256>}, {pipeline_mode = #tpu.pipeline_mode<synchronous>, transform_indices = @transform_3, window_bounds = array<i64: 256, 512>}, {pipeline_mode = #tpu.pipeline_mode<synchronous>, transform_indices = @transform_4, window_bounds = array<i64: 1, 512>}, {pipeline_mode = #tpu.pipeline_mode<synchronous>, transform_indices = @transform_5, window_bounds = array<i64: 512, 256>}, {pipeline_mode = #tpu.pipeline_mode<synchronous>, transform_indices = @transform_6, window_bounds = array<i64: 1, 256>}, {pipeline_mode = #tpu.pipeline_mode<synchronous>, transform_indices = @transform_7, window_bounds = array<i64: 256, 64>}, {pipeline_mode = #tpu.pipeline_mode<synchronous>, transform_indices = @transform_8, window_bounds = array<i64: 1, 64>}, {pipeline_mode = #tpu.pipeline_mode<synchronous>, transform_indices = @transform_9, window_bounds = array<i64: 64, 4>}, {pipeline_mode = #tpu.pipeline_mode<synchronous>, transform_indices = @transform_10, window_bounds = array<i64: 1, 4>}, {transform_indices = @transform_11, window_bounds = array<i64: 8, 4>}]} {
    %c0 = arith.constant 0 : index
    %c0_0 = arith.constant 0 : index
    %0 = vector.load %arg1[%c0, %c0_0] : memref<8x128xbf16, #tpu.memory_space<vmem>>, vector<8x128xbf16>
    %c0_1 = arith.constant 0 : index
    %c0_2 = arith.constant 0 : index
    %1 = vector.load %arg2[%c0_1, %c0_2] : memref<128x256xbf16, #tpu.memory_space<vmem>>, vector<128x256xbf16>
    %cst = arith.constant dense<0.000000e+00> : vector<8x256xf32>
    %2 = tpu.matmul %0, %1, %cst {dimension_numbers = #tpu.dot_dimension_numbers<[1], [0], [0], [1], [0, 0, 1, 1], [], []>} : vector<8x128xbf16>, vector<128x256xbf16>, vector<8x256xf32> -> vector<8x256xf32>
    %c0_3 = arith.constant 0 : index
    %c0_4 = arith.constant 0 : index
    %3 = vector.load %arg3[%c0_3, %c0_4] : memref<1x256xf32, #tpu.memory_space<vmem>>, vector<1x256xf32>
    %4 = vector.broadcast %3 : vector<1x256xf32> to vector<8x256xf32>
    %5 = arith.addf %2, %4 : vector<8x256xf32>
    %6 = arith.truncf %5 : vector<8x256xf32> to vector<8x256xbf16>
    %c0_5 = arith.constant 0 : index
    %c0_6 = arith.constant 0 : index
    %7 = vector.load %arg4[%c0_5, %c0_6] : memref<256x512xbf16, #tpu.memory_space<vmem>>, vector<256x512xbf16>
    %cst_7 = arith.constant dense<0.000000e+00> : vector<8x512xf32>
    %8 = tpu.matmul %6, %7, %cst_7 {dimension_numbers = #tpu.dot_dimension_numbers<[1], [0], [0], [1], [0, 0, 1, 1], [], []>} : vector<8x256xbf16>, vector<256x512xbf16>, vector<8x512xf32> -> vector<8x512xf32>
    %c0_8 = arith.constant 0 : index
    %c0_9 = arith.constant 0 : index
    %9 = vector.load %arg5[%c0_8, %c0_9] : memref<1x512xf32, #tpu.memory_space<vmem>>, vector<1x512xf32>
    %10 = vector.broadcast %9 : vector<1x512xf32> to vector<8x512xf32>
    %11 = arith.addf %8, %10 : vector<8x512xf32>
    %cst_10 = arith.constant 0.000000e+00 : f32
    %12 = vector.broadcast %cst_10 : f32 to vector<8x512xf32>
    %13 = arith.maximumf %11, %12 : vector<8x512xf32>
    %14 = arith.truncf %13 : vector<8x512xf32> to vector<8x512xbf16>
    %c0_11 = arith.constant 0 : index
    %c0_12 = arith.constant 0 : index
    %15 = vector.load %arg6[%c0_11, %c0_12] : memref<512x256xbf16, #tpu.memory_space<vmem>>, vector<512x256xbf16>
    %cst_13 = arith.constant dense<0.000000e+00> : vector<8x256xf32>
    %16 = tpu.matmul %14, %15, %cst_13 {dimension_numbers = #tpu.dot_dimension_numbers<[1], [0], [0], [1], [0, 0, 1, 1], [], []>} : vector<8x512xbf16>, vector<512x256xbf16>, vector<8x256xf32> -> vector<8x256xf32>
    %c0_14 = arith.constant 0 : index
    %c0_15 = arith.constant 0 : index
    %17 = vector.load %arg7[%c0_14, %c0_15] : memref<1x256xf32, #tpu.memory_space<vmem>>, vector<1x256xf32>
    %18 = vector.broadcast %17 : vector<1x256xf32> to vector<8x256xf32>
    %19 = arith.addf %16, %18 : vector<8x256xf32>
    %cst_16 = arith.constant 0.000000e+00 : f32
    %20 = vector.broadcast %cst_16 : f32 to vector<8x256xf32>
    %21 = arith.maximumf %19, %20 : vector<8x256xf32>
    %22 = arith.addf %21, %5 : vector<8x256xf32>
    %23 = arith.truncf %22 : vector<8x256xf32> to vector<8x256xbf16>
    %c0_17 = arith.constant 0 : index
    %c0_18 = arith.constant 0 : index
    %24 = vector.load %arg8[%c0_17, %c0_18] : memref<256x64xbf16, #tpu.memory_space<vmem>>, vector<256x64xbf16>
    %cst_19 = arith.constant dense<0.000000e+00> : vector<8x64xf32>
    %25 = tpu.matmul %23, %24, %cst_19 {dimension_numbers = #tpu.dot_dimension_numbers<[1], [0], [0], [1], [0, 0, 1, 1], [], []>} : vector<8x256xbf16>, vector<256x64xbf16>, vector<8x64xf32> -> vector<8x64xf32>
    %c0_20 = arith.constant 0 : index
    %c0_21 = arith.constant 0 : index
    %26 = vector.load %arg9[%c0_20, %c0_21] : memref<1x64xf32, #tpu.memory_space<vmem>>, vector<1x64xf32>
    %27 = vector.broadcast %26 : vector<1x64xf32> to vector<8x64xf32>
    %28 = arith.addf %25, %27 : vector<8x64xf32>
    %cst_22 = arith.constant 0.000000e+00 : f32
    %29 = vector.broadcast %cst_22 : f32 to vector<8x64xf32>
    %30 = arith.maximumf %28, %29 : vector<8x64xf32>
    %31 = arith.truncf %30 : vector<8x64xf32> to vector<8x64xbf16>
    %c0_23 = arith.constant 0 : index
    %c0_24 = arith.constant 0 : index
    %32 = vector.load %arg10[%c0_23, %c0_24] : memref<64x4xbf16, #tpu.memory_space<vmem>>, vector<64x4xbf16>
    %cst_25 = arith.constant dense<0.000000e+00> : vector<8x4xf32>
    %33 = tpu.matmul %31, %32, %cst_25 {dimension_numbers = #tpu.dot_dimension_numbers<[1], [0], [0], [1], [0, 0, 1, 1], [], []>} : vector<8x64xbf16>, vector<64x4xbf16>, vector<8x4xf32> -> vector<8x4xf32>
    %c0_26 = arith.constant 0 : index
    %c0_27 = arith.constant 0 : index
    %34 = vector.load %arg11[%c0_26, %c0_27] : memref<1x4xf32, #tpu.memory_space<vmem>>, vector<1x4xf32>
    %35 = vector.broadcast %34 : vector<1x4xf32> to vector<8x4xf32>
    %36 = arith.addf %33, %35 : vector<8x4xf32>
    %c0_28 = arith.constant 0 : index
    %c0_29 = arith.constant 0 : index
    %37 = vector.load %arg12[%c0_28, %c0_29] : memref<8x4xf32, #tpu.memory_space<vmem>>, vector<8x4xf32>
    tpu.vector_store %arg12[%c0_28, %c0_29], %36 {strides = array<i32>} : memref<8x4xf32, #tpu.memory_space<vmem>>, vector<8x4xf32>,
    return
  }
  func.func @transform_0(%arg0: i32) -> (i32, i32) {
    %c0_i32 = arith.constant 0 : i32
    %c0_i32_0 = arith.constant 0 : i32
    return %arg0, %c0_i32 : i32, i32
  }
  func.func @transform_1(%arg0: i32) -> (i32, i32) {
    %c0_i32 = arith.constant 0 : i32
    %c0_i32_0 = arith.constant 0 : i32
    %c0_i32_1 = arith.constant 0 : i32
    return %c0_i32, %c0_i32_0 : i32, i32
  }
  func.func @transform_2(%arg0: i32) -> (i32, i32) {
    %c0_i32 = arith.constant 0 : i32
    %c0_i32_0 = arith.constant 0 : i32
    %c0_i32_1 = arith.constant 0 : i32
    return %c0_i32, %c0_i32_0 : i32, i32
  }
  func.func @transform_3(%arg0: i32) -> (i32, i32) {
    %c0_i32 = arith.constant 0 : i32
    %c0_i32_0 = arith.constant 0 : i32
    %c0_i32_1 = arith.constant 0 : i32
    return %c0_i32, %c0_i32_0 : i32, i32
  }
  func.func @transform_4(%arg0: i32) -> (i32, i32) {
    %c0_i32 = arith.constant 0 : i32
    %c0_i32_0 = arith.constant 0 : i32
    %c0_i32_1 = arith.constant 0 : i32
    return %c0_i32, %c0_i32_0 : i32, i32
  }
  func.func @transform_5(%arg0: i32) -> (i32, i32) {
    %c0_i32 = arith.constant 0 : i32
    %c0_i32_0 = arith.constant 0 : i32
    %c0_i32_1 = arith.constant 0 : i32
    return %c0_i32, %c0_i32_0 : i32, i32
  }
  func.func @transform_6(%arg0: i32) -> (i32, i32) {
    %c0_i32 = arith.constant 0 : i32
    %c0_i32_0 = arith.constant 0 : i32
    %c0_i32_1 = arith.constant 0 : i32
    return %c0_i32, %c0_i32_0 : i32, i32
  }
  func.func @transform_7(%arg0: i32) -> (i32, i32) {
    %c0_i32 = arith.constant 0 : i32
    %c0_i32_0 = arith.constant 0 : i32
    %c0_i32_1 = arith.constant 0 : i32
    return %c0_i32, %c0_i32_0 : i32, i32
  }
  func.func @transform_8(%arg0: i32) -> (i32, i32) {
    %c0_i32 = arith.constant 0 : i32
    %c0_i32_0 = arith.constant 0 : i32
    %c0_i32_1 = arith.constant 0 : i32
    return %c0_i32, %c0_i32_0 : i32, i32
  }
  func.func @transform_9(%arg0: i32) -> (i32, i32) {
    %c0_i32 = arith.constant 0 : i32
    %c0_i32_0 = arith.constant 0 : i32
    %c0_i32_1 = arith.constant 0 : i32
    return %c0_i32, %c0_i32_0 : i32, i32
  }
  func.func @transform_10(%arg0: i32) -> (i32, i32) {
    %c0_i32 = arith.constant 0 : i32
    %c0_i32_0 = arith.constant 0 : i32
    %c0_i32_1 = arith.constant 0 : i32
    return %c0_i32, %c0_i32_0 : i32, i32
  }
  func.func @transform_11(%arg0: i32) -> (i32, i32) {
    %c0_i32 = arith.constant 0 : i32
    %c0_i32_0 = arith.constant 0 : i32
    return %arg0, %c0_i32 : i32, i32
  }
}

</mosaic_0001>

<bundles_post_ra>
// kernel: tpu_custom_call.1
= control target key start
LH: loop header
LB: loop body
LE: loop exit
PB: predicated region body
PF: predicated region fallthrough
CT: control target
= control target key end

     0   :  { %16 = vsyncpa [#allocation3], 0  ;;  %s2587_s0 = inlined_call_operand.vmem [shape: bf16[8,128], index: 0, kind: input, shape index: {}]   ;;  %s2588_s1 = inlined_call_operand.vmem [shape: bf16[128,256], index: 1, kind: input, shape index: {}]   ;;  %s2589_s2 = inlined_call_operand.vmem [shape: f32[1,256], index: 2, kind: input, shape index: {}]   ;;  %s2590_s3 = inlined_call_operand.hbm [shape: bf16[256,512], index: 3, kind: input, shape index: {}]   ;;  %s2591_s4 = inlined_call_operand.vmem [shape: f32[1,512], index: 4, kind: input, shape index: {}]   ;;  %s2592_s5 = inlined_call_operand.hbm [shape: bf16[512,256], index: 5, kind: input, shape index: {}]   ;;  %s2593_s6 = inlined_call_operand.vmem [shape: f32[1,256], index: 6, kind: input, shape index: {}]   ;;  %s2594_s7 = inlined_call_operand.vmem [shape: bf16[256,64], index: 7, kind: input, shape index: {}]   ;;  %s2595_s8 = inlined_call_operand.vmem [shape: f32[1,64], index: 8, kind: input, shape index: {}]   ;;  %s2596_s9 = inlined_call_operand.vmem [shape: bf16[64,4], index: 9, kind: input, shape index: {}]   ;;  %s2597_s10 = inlined_call_operand.vmem [shape: f32[1,4], index: 10, kind: input, shape index: {}]   ;;  %s2598_s11 = inlined_call_operand.vmem [shape: f32[8,4], index: 11, kind: output, shape index: {}]  }
   0x1   :  { %s28_s19 = sshll.u32 %s2590_s3, 4  ;;  %s29_s19 = int_to_ptr.hbm [resolvable:$true] %s28_s19 }
   0x2   :  { %17 = vsyncpa [#allocation5], 0  ;;  %s2310_s20 = smov [#allocation2]   ;;  %s43_s24 = sshll.u32 %s2592_s5, 4  ;;  %s44_s24 = int_to_ptr.hbm [resolvable:$true] %s43_s24 }
   0x3   :  { %s30_s21 = sshll.u32 %s2310_s20, 4  ;;  %s2311_s25 = smov 256   ;;  %s31_s21 = int_to_ptr.vmem [resolvable:$true] %s30_s21 }
   0x4   :  { %s2312_s26 = smov 16   ;;  %s2313_s27 = smov [#allocation4]  }
   0x5   :  { %36 = dma.hbm_to_vmem [thread:$0]  %s29_s19, 8192, %s31_s21, [#allocation3], %s2311_s25, %s2311_s25, %s2312_s26  }
   0x6   :  { %s45_s28 = sshll.u32 %s2313_s27, 4  ;;  %s2314_s29 = smov 128   ;;  %s46_s28 = int_to_ptr.vmem [resolvable:$true] %s45_s28 }
   0x7   :  { %s2315_s30 = smov 8  }
   0x8   :  { %51 = dma.hbm_to_vmem [thread:$0]  %s44_s24, 8192, %s46_s28, [#allocation5], %s2314_s29, %s2314_s29, %s2315_s30  }
   0x9   :  { %2306 = dma.done.wait [#allocation3], 8192  }
   0xa   :  { %2307 = vsyncadd [#allocation3], 4294959104 }
   0xb   :  { %2308 = dma.done.wait [#allocation5], 8192  }
   0xc   :  { %2309 = vsyncadd [#allocation5], 4294959104  ;;  %v1487_v0 = vld [vmem:[%s2588_s1 + $0x70] sm:$0xf]  ;;  %v2101_v1 = vld [vmem:[%s2588_s1 + $0x74] sm:$0xf0] }
   0xd   :  { %v2100_v2 = vld [vmem:[%s2588_s1 + $0x74] sm:$0xf]  ;;  %v1488_v3 = vor.u32 %v2101_v1, %v1487_v0  ;;  %v1489_v4 = vld [vmem:[%s2588_s1 + $0x78] sm:$0xf0]  ;;  %v1479_v5 = vld [vmem:[%s2588_s1 + $0x60] sm:$0xf] }
   0xe   :  { %v2099_v6 = vld [vmem:[%s2588_s1 + $0x64] sm:$0xf0]  ;;  %v1492_v7 = vor.u32 %v2100_v2, %v1489_v4  ;;  %v2098_v8 = vld [vmem:[%s2588_s1 + $0x64] sm:$0xf]  ;;  %v1481_v9 = vld [vmem:[%s2588_s1 + $0x68] sm:$0xf0] }
   0xf   :  { %174 = vmatpush.bf16.msra.mxu0 %v1488_v3  ;;  %v1480_v10 = vor.u32 %v2099_v6, %v1479_v5  ;;  %v1484_v11 = vor.u32 %v2098_v8, %v1481_v9  ;;  %v1471_v12 = vld [vmem:[%s2588_s1 + $0x50] sm:$0xf]  ;;  %v2097_v13 = vld [vmem:[%s2588_s1 + $0x54] sm:$0xf0]  ;;  %v2096_v14 = vld [vmem:[%s2588_s1 + $0x54] sm:$0xf] }
  0x10   :  { %187 = vmatpush.bf16.msra.mxu1 %v1492_v7  ;;  %v1473_v15 = vld [vmem:[%s2588_s1 + $0x58] sm:$0xf0]  ;;  %v1472_v16 = vor.u32 %v2097_v13, %v1471_v12  ;;  %v1463_v18 = vld [vmem:[%s2588_s1 + $0x40] sm:$0xf]  ;;  %v2095_v19 = vld [vmem:[%s2588_s1 + $0x44] sm:$0xf0] }
  0x11   :  { %v1476_v17 = vor.u32 %v2096_v14, %v1473_v15  ;;  %v2094_v20 = vld [vmem:[%s2588_s1 + $0x44] sm:$0xf]  ;;  %v1465_v21 = vld [vmem:[%s2588_s1 + $0x48] sm:$0xf0]  ;;  %v1464_v22 = vor.u32 %v2095_v19, %v1463_v18  ;;  %v1607_v23 = vld [vmem:[#allocation2 + $0xe0] sm:$0xf] }
  0x12   :  { %v2132_v24 = vld [vmem:[#allocation2 + $0xec] sm:$0xf0]  ;;  %v1735_v25 = vld [vmem:[#allocation2 + $0x1e0] sm:$0xf]  ;;  %v1468_v26 = vor.u32 %v2094_v20, %v1465_v21  ;;  %v2093_v28 = vld [vmem:[%s2588_s1 + $0x34] sm:$0xf0] }
  0x13   :  { %175 = vmatpush.bf16.msra.mxu0 %v1480_v10  ;;  %v1455_v27 = vld [vmem:[%s2588_s1 + $0x30] sm:$0xf]  ;;  %v1608_v29 = vor.u32 %v2132_v24, %v1607_v23  ;;  %v2092_v31 = vld [vmem:[%s2588_s1 + $0x34] sm:$0xf]  ;;  %v1457_v32 = vld [vmem:[%s2588_s1 + $0x38] sm:$0xf0] }
  0x14   :  { %188 = vmatpush.bf16.msra.mxu1 %v1484_v11  ;;  %v2164_v30 = vld [vmem:[#allocation2 + $0x1ec] sm:$0xf0]  ;;  %v1591_v34 = vld [vmem:[#allocation2 + $0xc0] sm:$0xf]  ;;  %v1456_v38 = vor.u32 %v2093_v28, %v1455_v27  ;;  %v2091_v40 = vld [vmem:[%s2588_s1 + $0x24] sm:$0xf0]  ;;  %v1460_v43 = vor.u32 %v2092_v31, %v1457_v32 }
  0x15   :  { %v1736_v33 = vor.u32 %v2164_v30, %v1735_v25  ;;  %596 = vmatpush.bf16.msra.mxu2 %v1608_v29  ;;  %v2128_v35 = vld [vmem:[#allocation2 + $0xcc] sm:$0xf0]  ;;  %v1719_v36 = vld [vmem:[#allocation2 + $0x1c0] sm:$0xf]  ;;  %v2090_v44 = vld [vmem:[%s2588_s1 + $0x24] sm:$0xf] }
  0x16   :  { %v2160_v37 = vld [vmem:[#allocation2 + $0x1cc] sm:$0xf0]  ;;  %v1447_v39 = vld [vmem:[%s2588_s1 + $0x20] sm:$0xf]  ;;  %v1592_v41 = vor.u32 %v2128_v35, %v1591_v34  ;;  %v1449_v47 = vld [vmem:[%s2588_s1 + $0x28] sm:$0xf0] }
  0x17   :  { %176 = vmatpush.bf16.msra.mxu0 %v1472_v16  ;;  %609 = vmatpush.bf16.msra.mxu3 %v1736_v33  ;;  %v1720_v42 = vor.u32 %v2160_v37, %v1719_v36  ;;  %v1575_v45 = vld [vmem:[#allocation2 + $0xa0] sm:$0xf]  ;;  %v2124_v46 = vld [vmem:[#allocation2 + $0xac] sm:$0xf0]  ;;  %v1448_v51 = vor.u32 %v2091_v40, %v1447_v39  ;;  %v1452_v56 = vor.u32 %v2090_v44, %v1449_v47  ;;  %v2089_v57 = vld [vmem:[%s2588_s1 + $0x14] sm:$0xf0] }
  0x18   :  { %189 = vmatpush.bf16.msra.mxu1 %v1476_v17  ;;  %v1703_v48 = vld [vmem:[#allocation2 + $0x1a0] sm:$0xf]  ;;  %v2156_v49 = vld [vmem:[#allocation2 + $0x1ac] sm:$0xf0]  ;;  %v1576_v50 = vor.u32 %v2124_v46, %v1575_v45  ;;  %v2088_v60 = vld [vmem:[%s2588_s1 + $0x14] sm:$0xf] }
  0x19   :  { %597 = vmatpush.bf16.msra.mxu2 %v1592_v41  ;;  %v1439_v52 = vld [vmem:[%s2588_s1 + $0x10] sm:$0xf]  ;;  %v1704_v53 = vor.u32 %v2156_v49, %v1703_v48  ;;  %v1559_v54 = vld [vmem:[#allocation2 + $0x80] sm:$0xf]  ;;  %v1441_v61 = vld [vmem:[%s2588_s1 + $0x18] sm:$0xf0] }
  0x1a   :  { %v2120_v55 = vld [vmem:[#allocation2 + $0x8c] sm:$0xf0]  ;;  %v1687_v58 = vld [vmem:[#allocation2 + $0x180] sm:$0xf]  ;;  %v1440_v0 = vor.u32 %v2089_v57, %v1439_v52  ;;  %v2087_v1 = vld [vmem:[%s2588_s1 + $0x4] sm:$0xf0]  ;;  %v1444_v5 = vor.u32 %v2088_v60, %v1441_v61 }
  0x1b   :  { %177 = vmatpush.bf16.msra.mxu0 %v1464_v22  ;;  %610 = vmatpush.bf16.msra.mxu3 %v1720_v42  ;;  %v2152_v59 = vld [vmem:[#allocation2 + $0x18c] sm:$0xf0]  ;;  %v1431_v62 = vld [vmem:[%s2588_s1] sm:$0xf]  ;;  %v1560_v63 = vor.u32 %v2120_v55, %v1559_v54  ;;  %v2086_v6 = vld [vmem:[%s2588_s1 + $0x4] sm:$0xf] }
  0x1c   :  { %190 = vmatpush.bf16.msra.mxu1 %v1468_v26  ;;  %v1688_v2 = vor.u32 %v2152_v59, %v1687_v58  ;;  %v1543_v3 = vld [vmem:[#allocation2 + $0x60] sm:$0xf]  ;;  %v2116_v4 = vld [vmem:[#allocation2 + $0x6c] sm:$0xf0]  ;;  %v1433_v9 = vld [vmem:[%s2588_s1 + $0x8] sm:$0xf0]  ;;  %v1432_v15 = vor.u32 %v2087_v1, %v1431_v62 }
  0x1d   :  { %598 = vmatpush.bf16.msra.mxu2 %v1576_v50  ;;  %v1671_v7 = vld [vmem:[#allocation2 + $0x160] sm:$0xf]  ;;  %v2148_v8 = vld [vmem:[#allocation2 + $0x16c] sm:$0xf0]  ;;  %v2130_v10 = vld [vmem:[#allocation2 + $0xe4] sm:$0xf]  ;;  %v1544_v14 = vor.u32 %v2116_v4, %v1543_v3  ;;  %v1436_v19 = vor.u32 %v2086_v6, %v1433_v9 }
  0x1e   :  { %v1609_v11 = vld [vmem:[#allocation2 + $0xf0] sm:$0xf0]  ;;  %v2162_v12 = vld [vmem:[#allocation2 + $0x1e4] sm:$0xf]  ;;  %v1672_v16 = vor.u32 %v2148_v8, %v1671_v7  ;;  %v1527_v17 = vld [vmem:[#allocation2 + $0x40] sm:$0xf] }
  0x1f   :  { %178 = vmatpush.bf16.msra.mxu0 %v1456_v38  ;;  %611 = vmatpush.bf16.msra.mxu3 %v1704_v53  ;;  %v1737_v13 = vld [vmem:[#allocation2 + $0x1f0] sm:$0xf0]  ;;  %v2112_v18 = vld [vmem:[#allocation2 + $0x4c] sm:$0xf0]  ;;  %v1612_v20 = vor.u32 %v2130_v10, %v1609_v11  ;;  %v1655_v21 = vld [vmem:[#allocation2 + $0x140] sm:$0xf] }
  0x20   :  { %191 = vmatpush.bf16.msra.mxu1 %v1460_v43  ;;  %v2144_v22 = vld [vmem:[#allocation2 + $0x14c] sm:$0xf0]  ;;  %v1740_v23 = vor.u32 %v2162_v12, %v1737_v13  ;;  %v2126_v24 = vld [vmem:[#allocation2 + $0xc4] sm:$0xf]  ;;  %v1593_v25 = vld [vmem:[#allocation2 + $0xd0] sm:$0xf0]  ;;  %v1528_v28 = vor.u32 %v2112_v18, %v1527_v17 }
  0x21   :  { %599 = vmatpush.bf16.msra.mxu2 %v1560_v63  ;;  %v2158_v26 = vld [vmem:[#allocation2 + $0x1c4] sm:$0xf]  ;;  %v1721_v27 = vld [vmem:[#allocation2 + $0x1d0] sm:$0xf0]  ;;  %v71_v29 = vld [vmem:[%s2587_s0] sm:$0xf]  ;;  %v1656_v30 = vor.u32 %v2144_v22, %v1655_v21  ;;  %v1596_v33 = vor.u32 %v2126_v24, %v1593_v25 }
  0x22   :  { %v1511_v31 = vld [vmem:[#allocation2 + $0x20] sm:$0xf]  ;;  %v2108_v32 = vld [vmem:[#allocation2 + $0x2c] sm:$0xf0]  ;;  %v1724_v36 = vor.u32 %v2158_v26, %v1721_v27  ;;  %v2122_v37 = vld [vmem:[#allocation2 + $0xa4] sm:$0xf] }
  0x23   :  { %179 = vmatpush.bf16.msra.mxu0 %v1448_v51  ;;  %612 = vmatpush.bf16.msra.mxu3 %v1688_v2  ;;  %v1639_v34 = vld [vmem:[#allocation2 + $0x120] sm:$0xf]  ;;  %v2140_v35 = vld [vmem:[#allocation2 + $0x12c] sm:$0xf0]  ;;  %v1577_v38 = vld [vmem:[#allocation2 + $0xb0] sm:$0xf0]  ;;  %v1512_v41 = vor.u32 %v2108_v32, %v1511_v31 }
  0x24   :  { %192 = vmatpush.bf16.msra.mxu1 %v1452_v56  ;;  %v2154_v39 = vld [vmem:[#allocation2 + $0x1a4] sm:$0xf]  ;;  %v1705_v40 = vld [vmem:[#allocation2 + $0x1b0] sm:$0xf0]  ;;  %v1640_v43 = vor.u32 %v2140_v35, %v1639_v34  ;;  %v1495_v44 = vld [vmem:[#allocation2] sm:$0xf]  ;;  %v1580_v47 = vor.u32 %v2122_v37, %v1577_v38 }
  0x25   :  { %600 = vmatpush.bf16.msra.mxu2 %v1544_v14  ;;  %v2118_v42 = vld [vmem:[#allocation2 + $0x84] sm:$0xf]  ;;  %v2104_v45 = vld [vmem:[#allocation2 + $0xc] sm:$0xf0]  ;;  %v1623_v46 = vld [vmem:[#allocation2 + $0x100] sm:$0xf]  ;;  %v1708_v51 = vor.u32 %v2154_v39, %v1705_v40 }
  0x26   :  { %v2136_v48 = vld [vmem:[#allocation2 + $0x10c] sm:$0xf0]  ;;  %v1615_v49 = vld [vmem:[#allocation2 + $0xe8] sm:$0xf]  ;;  %v2133_v50 = vld [vmem:[#allocation2 + $0xf4] sm:$0xf0]  ;;  %v1496_v57 = vor.u32 %v2104_v45, %v1495_v44 }
  0x27   :  { %180 = vmatpush.bf16.msra.mxu0 %v1440_v0  ;;  %613 = vmatpush.bf16.msra.mxu3 %v1672_v16  ;;  %v1561_v52 = vld [vmem:[#allocation2 + $0x90] sm:$0xf0]  ;;  %v1743_v53 = vld [vmem:[#allocation2 + $0x1e8] sm:$0xf]  ;;  %v2165_v54 = vld [vmem:[#allocation2 + $0x1f4] sm:$0xf0]  ;;  %v1624_v60 = vor.u32 %v2136_v48, %v1623_v46  ;;  %v1616_v61 = vor.u32 %v2133_v50, %v1615_v49 }
  0x28   :  { %193 = vmatpush.bf16.msra.mxu1 %v1444_v5  ;;  %v2150_v55 = vld [vmem:[#allocation2 + $0x184] sm:$0xf]  ;;  %v1689_v56 = vld [vmem:[#allocation2 + $0x190] sm:$0xf0]  ;;  %v1564_v62 = vor.u32 %v2118_v42, %v1561_v52  ;;  %v1744_v63 = vor.u32 %v2165_v54, %v1743_v53  ;;  %v1599_v0 = vld [vmem:[#allocation2 + $0xc8] sm:$0xf] }
  0x29   :  { %601 = vmatpush.bf16.msra.mxu2 %v1528_v28  ;;  %v2114_v58 = vld [vmem:[#allocation2 + $0x64] sm:$0xf]  ;;  %v1545_v59 = vld [vmem:[#allocation2 + $0x70] sm:$0xf0]  ;;  %v2129_v1 = vld [vmem:[#allocation2 + $0xd4] sm:$0xf0]  ;;  %v1692_v2 = vor.u32 %v2150_v55, %v1689_v56 }
  0x2a   :  { %v1727_v3 = vld [vmem:[#allocation2 + $0x1c8] sm:$0xf]  ;;  %v2161_v4 = vld [vmem:[#allocation2 + $0x1d4] sm:$0xf0]  ;;  %v2146_v5 = vld [vmem:[#allocation2 + $0x164] sm:$0xf]  ;;  %v1600_v7 = vor.u32 %v2129_v1, %v1599_v0  ;;  %v1548_v8 = vor.u32 %v2114_v58, %v1545_v59 }
  0x2b   :  { %181 = vmatpush.bf16.msra.mxu0 %v1432_v15  ;;  %614 = vmatpush.bf16.msra.mxu3 %v1656_v30  ;;  %v1673_v6 = vld [vmem:[#allocation2 + $0x170] sm:$0xf0]  ;;  %v2110_v9 = vld [vmem:[#allocation2 + $0x44] sm:$0xf]  ;;  %v1728_v10 = vor.u32 %v2161_v4, %v1727_v3  ;;  %v1583_v11 = vld [vmem:[#allocation2 + $0xa8] sm:$0xf] }
  0x2c   :  { %194 = vmatpush.bf16.msra.mxu1 %v1436_v19  ;;  %v2125_v12 = vld [vmem:[#allocation2 + $0xb4] sm:$0xf0]  ;;  %v1676_v13 = vor.u32 %v2146_v5, %v1673_v6  ;;  %v1529_v14 = vld [vmem:[#allocation2 + $0x50] sm:$0xf0]  ;;  %v1711_v15 = vld [vmem:[#allocation2 + $0x1a8] sm:$0xf] }
  0x2d   :  { %602 = vmatpush.bf16.msra.mxu2 %v1512_v41  ;;  %v2157_v16 = vld [vmem:[#allocation2 + $0x1b4] sm:$0xf0]  ;;  %v2142_v17 = vld [vmem:[#allocation2 + $0x144] sm:$0xf]  ;;  %v1657_v18 = vld [vmem:[#allocation2 + $0x150] sm:$0xf0]  ;;  %v1584_v19 = vor.u32 %v2125_v12, %v1583_v11 }
  0x2e   :  { %182 = vmatmul.bf16.vlgmr.msra.gmra.mxu0 %v71_v29  ;;  %v1712_v21 = vor.u32 %v2157_v16, %v1711_v15  ;;  %v1660_v22 = vor.u32 %v2142_v17, %v1657_v18  ;;  %v1513_v24 = vld [vmem:[#allocation2 + $0x30] sm:$0xf0]  ;;  %v2138_v25 = vld [vmem:[#allocation2 + $0x124] sm:$0xf]  ;;  %v1617_v34 = vld [vmem:[#allocation2 + $0xf8] sm:$0xf0] }
  0x2f   :  { %622 = vmatpush.bf16.msrb.mxu0 %v1612_v20  ;;  %195 = vmatmul.bf16.vlgmr.msra.gmra.mxu1 %v71_v29  ;;  %v1532_v20 = vor.u32 %v2110_v9, %v1529_v14  ;;  %v1641_v26 = vld [vmem:[#allocation2 + $0x130] sm:$0xf0]  ;;  %v2102_v29 = vld [vmem:[#allocation2 + $0x4] sm:$0xf]  ;;  %v2163_v35 = vld [vmem:[#allocation2 + $0x1ec] sm:$0xf] }
  0x30   :  { %635 = vmatpush.bf16.msrb.mxu1 %v1740_v23  ;;  %615 = vmatpush.bf16.msra.mxu3 %v1640_v43  ;;  %v2106_v23 = vld [vmem:[#allocation2 + $0x24] sm:$0xf]  ;;  %v1644_v28 = vor.u32 %v2138_v25, %v1641_v26  ;;  %v1497_v30 = vld [vmem:[#allocation2 + $0x10] sm:$0xf0]  ;;  %v2127_v41 = vld [vmem:[#allocation2 + $0xcc] sm:$0xf] }
  0x31   :  { %603 = vmatpush.bf16.msra.mxu2 %v1496_v57  ;;  %v1516_v27 = vor.u32 %v2106_v23, %v1513_v24  ;;  %v2134_v31 = vld [vmem:[#allocation2 + $0x104] sm:$0xf]  ;;  %v1625_v32 = vld [vmem:[#allocation2 + $0x110] sm:$0xf0]  ;;  %v1500_v37 = vor.u32 %v2102_v29, %v1497_v30  ;;  %v1601_v42 = vld [vmem:[#allocation2 + $0xd8] sm:$0xf0] }
  0x32   :  { %v1628_v38 = vor.u32 %v2134_v31, %v1625_v32  ;;  %v2159_v43 = vld [vmem:[#allocation2 + $0x1cc] sm:$0xf]  ;;  %v1729_v44 = vld [vmem:[#allocation2 + $0x1d8] sm:$0xf0]  ;;  %v1604_v45 = vor.u32 %v2127_v41, %v1601_v42  ;;  %v1567_v53 = vld [vmem:[#allocation2 + $0x88] sm:$0xf] }
  0x33   :  { %623 = vmatpush.bf16.msrb.mxu0 %v1596_v33  ;;  %v2131_v33 = vld [vmem:[#allocation2 + $0xec] sm:$0xf]  ;;  %v1732_v46 = vor.u32 %v2159_v43, %v1729_v44  ;;  %v1585_v48 = vld [vmem:[#allocation2 + $0xb8] sm:$0xf0]  ;;  %v2121_v54 = vld [vmem:[#allocation2 + $0x94] sm:$0xf0] }
  0x34   :  { %636 = vmatpush.bf16.msrb.mxu1 %v1724_v36  ;;  %616 = vmatpush.bf16.msra.mxu3 %v1624_v60  ;;  %v1745_v36 = vld [vmem:[#allocation2 + $0x1f8] sm:$0xf0]  ;;  %v1620_v39 = vor.u32 %v2131_v33, %v1617_v34  ;;  %v2155_v49 = vld [vmem:[#allocation2 + $0x1ac] sm:$0xf]  ;;  %v1568_v55 = vor.u32 %v2121_v54, %v1567_v53  ;;  %v1695_v56 = vld [vmem:[#allocation2 + $0x188] sm:$0xf] }
  0x35   :  { %648 = vmatpush.bf16.msrb.mxu2 %v1616_v61  ;;  %v1748_v40 = vor.u32 %v2163_v35, %v1745_v36  ;;  %v1713_v50 = vld [vmem:[#allocation2 + $0x1b8] sm:$0xf0]  ;;  %v2153_v57 = vld [vmem:[#allocation2 + $0x194] sm:$0xf0]  ;;  %v2119_v58 = vld [vmem:[#allocation2 + $0x8c] sm:$0xf] }
  0x36   :  { %v1716_v52 = vor.u32 %v2155_v49, %v1713_v50  ;;  %v1696_v59 = vor.u32 %v2153_v57, %v1695_v56  ;;  %v1569_v60 = vld [vmem:[#allocation2 + $0x98] sm:$0xf0]  ;;  %v2151_v61 = vld [vmem:[#allocation2 + $0x18c] sm:$0xf]  ;;  %v1551_v1 = vld [vmem:[#allocation2 + $0x68] sm:$0xf] }
  0x37   :  { %624 = vmatpush.bf16.msrb.mxu0 %v1580_v47  ;;  %v2123_v47 = vld [vmem:[#allocation2 + $0xac] sm:$0xf]  ;;  %v1679_v3 = vld [vmem:[#allocation2 + $0x168] sm:$0xf]  ;;  %v2149_v5 = vld [vmem:[#allocation2 + $0x174] sm:$0xf0] }
  0x38   :  { %637 = vmatpush.bf16.msrb.mxu1 %v1708_v51  ;;  %661 = vmatpush.bf16.msrb.mxu3 %v1744_v63  ;;  %v1588_v51 = vor.u32 %v2123_v47, %v1585_v48  ;;  %v1572_v63 = vor.u32 %v2119_v58, %v1569_v60  ;;  %v2115_v6 = vld [vmem:[#allocation2 + $0x6c] sm:$0xf]  ;;  %v1681_v11 = vld [vmem:[#allocation2 + $0x178] sm:$0xf0]  ;;  %v2113_v14 = vld [vmem:[#allocation2 + $0x54] sm:$0xf0] }
  0x39   :  { %649 = vmatpush.bf16.msrb.mxu2 %v1600_v7  ;;  %v1553_v7 = vld [vmem:[#allocation2 + $0x78] sm:$0xf0]  ;;  %v1663_v15 = vld [vmem:[#allocation2 + $0x148] sm:$0xf]  ;;  %v2145_v17 = vld [vmem:[#allocation2 + $0x154] sm:$0xf0] }
  0x3a   :  { %v1556_v9 = vor.u32 %v2115_v6, %v1553_v7  ;;  %v2111_v18 = vld [vmem:[#allocation2 + $0x4c] sm:$0xf]  ;;  %v1665_v23 = vld [vmem:[#allocation2 + $0x158] sm:$0xf0]  ;;  %v1519_v24 = vld [vmem:[#allocation2 + $0x28] sm:$0xf] }
  0x3b   :  { %625 = vmatpush.bf16.msrb.mxu0 %v1564_v62  ;;  %v1697_v62 = vld [vmem:[#allocation2 + $0x198] sm:$0xf0]  ;;  %v2109_v26 = vld [vmem:[#allocation2 + $0x34] sm:$0xf0]  ;;  %v2107_v31 = vld [vmem:[#allocation2 + $0x2c] sm:$0xf] }
  0x3c   :  { %638 = vmatpush.bf16.msrb.mxu1 %v1692_v2  ;;  %662 = vmatpush.bf16.msrb.mxu3 %v1728_v10  ;;  %v1700_v0 = vor.u32 %v2151_v61, %v1697_v62  ;;  %v2117_v2 = vld [vmem:[#allocation2 + $0x74] sm:$0xf0]  ;;  %v2147_v10 = vld [vmem:[#allocation2 + $0x16c] sm:$0xf]  ;;  %v1520_v29 = vor.u32 %v2109_v26, %v1519_v24  ;;  %v1521_v32 = vld [vmem:[#allocation2 + $0x38] sm:$0xf0] }
  0x3d   :  { %650 = vmatpush.bf16.msrb.mxu2 %v1584_v19  ;;  %v1552_v4 = vor.u32 %v2117_v2, %v1551_v1  ;;  %v1684_v12 = vor.u32 %v2147_v10, %v1681_v11  ;;  %v1537_v19 = vld [vmem:[#allocation2 + $0x58] sm:$0xf0]  ;;  %v2139_v33 = vld [vmem:[#allocation2 + $0x12c] sm:$0xf]  ;;  %v1524_v34 = vor.u32 %v2107_v31, %v1521_v32  ;;  %v1503_v36 = vld [vmem:[#allocation2 + $0x8] sm:$0xf] }
  0x3e   :  { %v1649_v35 = vld [vmem:[#allocation2 + $0x138] sm:$0xf0]  ;;  %v2103_v41 = vld [vmem:[#allocation2 + $0xc] sm:$0xf]  ;;  %v88_v49 = vld [vmem:[%s2589_s2] sm:$0x3] }
  0x3f   :  { %626 = vmatpush.bf16.msrb.mxu0 %v1548_v8  ;;  %v1680_v8 = vor.u32 %v2149_v5, %v1679_v3  ;;  %v1505_v43 = vld [vmem:[#allocation2 + $0x18] sm:$0xf0]  ;;  %v2135_v44 = vld [vmem:[#allocation2 + $0x10c] sm:$0xf]  ;;  %v90_v50 = vperm.slane %v88_v49, 0  ;;  %vm1404_vm0 = vcmask 523264  }
  0x40   :  { %639 = vmatpush.bf16.msrb.mxu1 %v1676_v13  ;;  %663 = vmatpush.bf16.msrb.mxu3 %v1712_v21  ;;  %v1535_v13 = vld [vmem:[#allocation2 + $0x48] sm:$0xf]  ;;  %v1540_v21 = vor.u32 %v2111_v18, %v1537_v19  ;;  %v1508_v47 = vor.u32 %v2103_v41, %v1505_v43  ;;  %v2197_v53 = vld [vmem:[#allocation4 + $0xf4] sm:$0xf0]  ;;  %v1999_v57 = vld [vmem:[#allocation4 + $0x1f0] sm:$0xf] }
  0x41   :  { %651 = vmatpush.bf16.msrb.mxu2 %v1568_v55  ;;  %v1536_v16 = vor.u32 %v2113_v14, %v1535_v13  ;;  %v1807_v55 = vld [vmem:[#allocation4 + $0x70] sm:$0xf]  ;;  %v2181_v56 = vld [vmem:[#allocation4 + $0x74] sm:$0xf0]  ;;  %v1863_v2 = vld [vmem:[#allocation4 + $0xe0] sm:$0xf] }
  0x42   :  { %v2229_v60 = vld [vmem:[#allocation4 + $0x1f4] sm:$0xf0]  ;;  %v1935_v61 = vld [vmem:[#allocation4 + $0x170] sm:$0xf]  ;;  %v2195_v3 = vld [vmem:[#allocation4 + $0xe4] sm:$0xf0] }
  0x43   :  { %627 = vmatpush.bf16.msrb.mxu0 %v1532_v20  ;;  %v1664_v20 = vor.u32 %v2145_v17, %v1663_v15  ;;  %v2213_v62 = vld [vmem:[#allocation4 + $0x174] sm:$0xf0]  ;;  %v1799_v6 = vld [vmem:[#allocation4 + $0x60] sm:$0xf]  ;;  %v2179_v7 = vld [vmem:[#allocation4 + $0x64] sm:$0xf0]  ;;  %v1864_v14 = vor.u32 %v2195_v3, %v1863_v2 }
  0x44   :  { %640 = vmatpush.bf16.msrb.mxu1 %v1660_v22  ;;  %664 = vmatpush.bf16.msrb.mxu3 %v1696_v59  ;;  %v2143_v22 = vld [vmem:[#allocation2 + $0x14c] sm:$0xf]  ;;  %v1936_v10 = vor.u32 %v2213_v62, %v1935_v61  ;;  %v2227_v11 = vld [vmem:[#allocation4 + $0x1e4] sm:$0xf0]  ;;  %v1855_v15 = vld [vmem:[#allocation4 + $0xd0] sm:$0xf]  ;;  %v1800_v17 = vor.u32 %v2179_v7, %v1799_v6 }
  0x45   :  { %652 = vmatpush.bf16.msrb.mxu2 %v1552_v4  ;;  %v1668_v25 = vor.u32 %v2143_v22, %v1665_v23  ;;  %v1808_v4 = vor.u32 %v2181_v56, %v1807_v55  ;;  %v2211_v13 = vld [vmem:[#allocation4 + $0x164] sm:$0xf0]  ;;  %v1791_v19 = vld [vmem:[#allocation4 + $0x50] sm:$0xf]  ;;  %v1783_v32 = vld [vmem:[#allocation4 + $0x40] sm:$0xf] }
  0x46   :  { %v1983_v22 = vld [vmem:[#allocation4 + $0x1d0] sm:$0xf]  ;;  %v2189_v43 = vld [vmem:[#allocation4 + $0xb4] sm:$0xf0]  ;;  %v2171_v55 = vld [vmem:[#allocation4 + $0x24] sm:$0xf0] }
  0x47   :  { %628 = vmatpush.bf16.msrb.mxu0 %v1516_v27  ;;  %v1647_v27 = vld [vmem:[#allocation2 + $0x128] sm:$0xf]  ;;  %v1919_v26 = vld [vmem:[#allocation4 + $0x150] sm:$0xf]  ;;  %v2185_v61 = vld [vmem:[#allocation4 + $0x94] sm:$0xf0] }
  0x48   :  { %641 = vmatpush.bf16.msrb.mxu1 %v1644_v28  ;;  %665 = vmatpush.bf16.msrb.mxu3 %v1680_v8  ;;  %v2141_v28 = vld [vmem:[#allocation2 + $0x134] sm:$0xf0]  ;;  %v2000_v8 = vor.u32 %v2229_v60, %v1999_v57  ;;  %v1839_v41 = vld [vmem:[#allocation4 + $0xb0] sm:$0xf]  ;;  %v1815_v3 = vld [vmem:[#allocation4 + $0x80] sm:$0xf] }
  0x49   :  { %653 = vmatpush.bf16.msrb.mxu2 %v1536_v16  ;;  %v1648_v30 = vor.u32 %v2141_v28, %v1647_v27  ;;  %v2193_v16 = vld [vmem:[#allocation4 + $0xd4] sm:$0xf0]  ;;  %v1759_v62 = vld [vmem:[#allocation4 + $0x10] sm:$0xf]  ;;  %v2183_v6 = vld [vmem:[#allocation4 + $0x84] sm:$0xf0] }
  0x4a   :  { %v2209_v27 = vld [vmem:[#allocation4 + $0x154] sm:$0xf0]  ;;  %v1856_v28 = vor.u32 %v2193_v16, %v1855_v15  ;;  %v2167_v7 = vld [vmem:[#allocation4 + $0x4] sm:$0xf0]  ;;  %v2180_v15 = vld [vmem:[#allocation4 + $0x74] sm:$0xf] }
  0x4b   :  { %629 = vmatpush.bf16.msrb.mxu0 %v1500_v37  ;;  %v2105_v37 = vld [vmem:[#allocation2 + $0x14] sm:$0xf0]  ;;  %v1809_v16 = vld [vmem:[#allocation4 + $0x78] sm:$0xf0]  ;;  %vm1421_vm1 = vcmask 31744  }
  0x4c   :  { %642 = vmatpush.bf16.msrb.mxu1 %v1628_v38  ;;  %666 = vmatpush.bf16.msrb.mxu3 %v1664_v20  ;;  %v1652_v38 = vor.u32 %v2139_v33, %v1649_v35  ;;  %v1504_v42 = vor.u32 %v2105_v37, %v1503_v36  ;;  %v2177_v20 = vld [vmem:[#allocation4 + $0x54] sm:$0xf0]  ;;  %v2175_v33 = vld [vmem:[#allocation4 + $0x44] sm:$0xf0]  ;;  %v1975_v35 = vld [vmem:[#allocation4 + $0x1c0] sm:$0xf]  ;;  %v1920_v36 = vor.u32 %v2209_v27, %v1919_v26 }
  0x4d   :  { %654 = vmatpush.bf16.msrb.mxu2 %v1520_v29  ;;  %v1847_v29 = vld [vmem:[#allocation4 + $0xc0] sm:$0xf]  ;;  %v1792_v31 = vor.u32 %v2177_v20, %v1791_v19  ;;  %v2223_v37 = vld [vmem:[#allocation4 + $0x1c4] sm:$0xf0]  ;;  %v2178_v27 = vld [vmem:[#allocation4 + $0x64] sm:$0xf] }
  0x4e   :  { %v2219_v19 = vld [vmem:[#allocation4 + $0x1a4] sm:$0xf0] }
  0x4f   :  { %674 = vmatpush.bf16.msra.mxu0 %v1620_v39  ;;  %v1631_v39 = vld [vmem:[#allocation2 + $0x108] sm:$0xf] }
  0x50   :  { %687 = vmatpush.bf16.msra.mxu1 %v1748_v40  ;;  %v2137_v40 = vld [vmem:[#allocation2 + $0x114] sm:$0xf0]  ;;  %667 = vmatpush.bf16.msrb.mxu3 %v1648_v30  ;;  %v2191_v30 = vld [vmem:[#allocation4 + $0xc4] sm:$0xf0] }
  0x51   :  { %655 = vmatpush.bf16.msrb.mxu2 %v1504_v42  ;;  %v1784_v42 = vor.u32 %v2175_v33, %v1783_v32  ;;  %v2190_v33 = vld [vmem:[#allocation4 + $0xc4] sm:$0xf] }
  0x53   :  { %675 = vmatpush.bf16.msra.mxu0 %v1604_v45  ;;  %v1633_v45 = vld [vmem:[#allocation2 + $0x118] sm:$0xf0] }
  0x54   :  { %688 = vmatpush.bf16.msra.mxu1 %v1732_v46  ;;  %v1632_v46 = vor.u32 %v2137_v40, %v1631_v39  ;;  %v1636_v48 = vor.u32 %v2135_v44, %v1633_v45  ;;  %v2207_v39 = vld [vmem:[#allocation4 + $0x144] sm:$0xf0]  ;;  %v1848_v40 = vor.u32 %v2191_v30, %v1847_v29  ;;  %v1775_v44 = vld [vmem:[#allocation4 + $0x30] sm:$0xf]  ;;  %v2173_v45 = vld [vmem:[#allocation4 + $0x34] sm:$0xf0] }
  0x55   :  { %v1951_v30 = vld [vmem:[#allocation4 + $0x190] sm:$0xf] }
  0x56   :  { %668 = vmatpush.bf16.msrb.mxu3 %v1632_v46  ;;  %v1976_v46 = vor.u32 %v2223_v37, %v1975_v35  ;;  %v2203_v37 = vld [vmem:[#allocation4 + $0x124] sm:$0xf0] }
  0x57   :  { %676 = vmatpush.bf16.msra.mxu0 %v1588_v51  ;;  %v91_v51 = vperm.slane %v88_v49, 1  ;;  %v2221_v49 = vld [vmem:[#allocation4 + $0x1b4] sm:$0xf0] }
  0x58   :  { %689 = vmatpush.bf16.msra.mxu1 %v1716_v52  ;;  %v1871_v52 = vld [vmem:[#allocation4 + $0xf0] sm:$0xf] }
  0x59   :  { %v1872_v1 = vor.u32 %v2197_v53, %v1871_v52  ;;  %v1776_v52 = vor.u32 %v2173_v45, %v1775_v44  ;;  %v2187_v53 = vld [vmem:[#allocation4 + $0xa4] sm:$0xf0]  ;;  %v2188_v45 = vld [vmem:[#allocation4 + $0xb4] sm:$0xf] }
  0x5b   :  { %677 = vmatpush.bf16.msra.mxu0 %v1572_v63 }
  0x5c   :  { %690 = vmatpush.bf16.msra.mxu1 %v1700_v0 }
  0x5f   :  { %678 = vmatpush.bf16.msra.mxu0 %v1556_v9  ;;  %v1991_v9 = vld [vmem:[#allocation4 + $0x1e0] sm:$0xf] }
  0x60   :  { %691 = vmatpush.bf16.msra.mxu1 %v1684_v12  ;;  %v1927_v12 = vld [vmem:[#allocation4 + $0x160] sm:$0xf] }
  0x61   :  { %v1928_v23 = vor.u32 %v2211_v13, %v1927_v12  ;;  %v2194_v12 = vld [vmem:[#allocation4 + $0xe4] sm:$0xf]  ;;  %v1865_v13 = vld [vmem:[#allocation4 + $0xe8] sm:$0xf0] }
  0x63   :  { %679 = vmatpush.bf16.msra.mxu0 %v1540_v21  ;;  %v1992_v21 = vor.u32 %v2227_v11, %v1991_v9  ;;  %v1873_v9 = vld [vmem:[#allocation4 + $0xf8] sm:$0xf0] }
  0x64   :  { %692 = vmatpush.bf16.msra.mxu1 %v1668_v25  ;;  %v2225_v25 = vld [vmem:[#allocation4 + $0x1d4] sm:$0xf0] }
  0x67   :  { %680 = vmatpush.bf16.msra.mxu0 %v1524_v34  ;;  %v1984_v34 = vor.u32 %v2225_v25, %v1983_v22  ;;  %v1857_v22 = vld [vmem:[#allocation4 + $0xd8] sm:$0xf0]  ;;  %v2205_v25 = vld [vmem:[#allocation4 + $0x134] sm:$0xf0] }
  0x68   :  { %693 = vmatpush.bf16.msra.mxu1 %v1652_v38  ;;  %v1911_v38 = vld [vmem:[#allocation4 + $0x140] sm:$0xf] }
  0x6b   :  { %681 = vmatpush.bf16.msra.mxu0 %v1508_v47  ;;  %v1912_v47 = vor.u32 %v2207_v39, %v1911_v38  ;;  %v2176_v39 = vld [vmem:[#allocation4 + $0x54] sm:$0xf] }
  0x6c   :  { %694 = vmatpush.bf16.msra.mxu1 %v1636_v48  ;;  %v1967_v48 = vld [vmem:[#allocation4 + $0x1b0] sm:$0xf] }
  0x6d   :  { %v1968_v56 = vor.u32 %v2221_v49, %v1967_v48  ;;  %v2001_v49 = vld [vmem:[#allocation4 + $0x1f8] sm:$0xf0] }
  0xab   :  { %v183_v54 = vpop.f32.mrf.mxu0 }
  0xac   :  { %v2484_v58 = vadd.f32 %v183_v54, %v90_v50  ;;  %v196_v59 = vpop.f32.mrf.mxu1  ;;  %v1840_v50 = vor.u32 %v2189_v43, %v1839_v41  ;;  %v1767_v54 = vld [vmem:[#allocation4 + $0x20] sm:$0xf]  ;;  %v2215_v43 = vld [vmem:[#allocation4 + $0x184] sm:$0xf0] }
  0xad   :  { %v2486_v63 = vadd.f32 %v196_v59, %v91_v51  ;;  %v1831_v51 = vld [vmem:[#allocation4 + $0xa0] sm:$0xf]  ;;  %v1823_v59 = vld [vmem:[#allocation4 + $0x90] sm:$0xf]  ;;  %v1768_v60 = vor.u32 %v2171_v55, %v1767_v54  ;;  %v2174_v54 = vld [vmem:[#allocation4 + $0x44] sm:$0xf] }
  0xae   :  { %v2490_v0 = vpack.c.bf16 %v2484_v58, %v2484_v58  ;;  %v1832_v57 = vor.u32 %v2187_v53, %v1831_v51  ;;  %v1824_v2 = vor.u32 %v2185_v61, %v1823_v59  ;;  %v2201_v51 = vld [vmem:[#allocation4 + $0x114] sm:$0xf0]  ;;  %v1785_v55 = vld [vmem:[#allocation4 + $0x48] sm:$0xf0] }
  0xaf   :  { %v2494_v5 = vpack.c.bf16 %v2486_v63, %v2486_v63  ;;  %v1833_v59 = vld [vmem:[#allocation4 + $0xa8] sm:$0xf0] }
  0xb0   :  { %604 = vmatmul.bf16.vlgmr.msra.gmra.mxu2 %v2490_v0  ;;  %630 = vmatmul.bf16.vlgmr.msrb.gmra.mxu0 %v2490_v0 }
  0xb1   :  { %617 = vmatmul.bf16.vlgmr.msra.gmra.mxu3 %v2494_v5  ;;  %643 = vmatmul.bf16.vlgmr.msrb.gmra.mxu1 %v2494_v5 }
  0xb2   :  { %1111 = vmatpush.bf16.msra.mxu3 %v1872_v1  ;;  %1098 = vmatpush.bf16.msra.mxu2 %v1808_v4  ;;  %v2169_v1 = vld [vmem:[#allocation4 + $0x14] sm:$0xf0] }
  0xb3   :  { %v185_v18 = vpop.f32.mrf.mxu0  ;;  %1137 = vmatpush.bf16.msrb.mxu1 %v2000_v8  ;;  %1124 = vmatpush.bf16.msrb.mxu0 %v1936_v10  ;;  %v1760_v4 = vor.u32 %v2169_v1, %v1759_v62  ;;  %v2196_v8 = vld [vmem:[#allocation4 + $0xf4] sm:$0xf]  ;;  %v1993_v62 = vld [vmem:[#allocation4 + $0x1e8] sm:$0xf0]  ;;  %v1879_v1 = vld [vmem:[#allocation4 + $0x100] sm:$0xf] }
  0xb4   :  { %v198_v24 = vpop.f32.mrf.mxu1  ;;  %v1876_v11 = vor.u32 %v2196_v8, %v1873_v9  ;;  %v1959_v18 = vld [vmem:[#allocation4 + $0x1a0] sm:$0xf]  ;;  %v1937_v9 = vld [vmem:[#allocation4 + $0x178] sm:$0xf0] }
  0xb5   :  { %v1960_v20 = vor.u32 %v2219_v19, %v1959_v18  ;;  %v1903_v24 = vld [vmem:[#allocation4 + $0x130] sm:$0xf]  ;;  %v2210_v18 = vld [vmem:[#allocation4 + $0x164] sm:$0xf] }
  0xb6   :  { %1112 = vmatpush.bf16.msra.mxu3 %v1864_v14  ;;  %1099 = vmatpush.bf16.msra.mxu2 %v1800_v17  ;;  %v1868_v14 = vor.u32 %v2194_v12, %v1865_v13  ;;  %v1812_v17 = vor.u32 %v2180_v15, %v1809_v16  ;;  %v1904_v26 = vor.u32 %v2205_v25, %v1903_v24  ;;  %v2224_v12 = vld [vmem:[#allocation4 + $0x1d4] sm:$0xf]  ;;  %v2170_v16 = vld [vmem:[#allocation4 + $0x24] sm:$0xf] }
  0xb7   :  { %1138 = vmatpush.bf16.msrb.mxu1 %v1992_v21  ;;  %1125 = vmatpush.bf16.msrb.mxu0 %v1928_v23  ;;  %v2192_v21 = vld [vmem:[#allocation4 + $0xd4] sm:$0xf]  ;;  %v2222_v24 = vld [vmem:[#allocation4 + $0x1c4] sm:$0xf] }
  0xb8   :  { %v1860_v23 = vor.u32 %v2192_v21, %v1857_v22  ;;  %v2182_v22 = vld [vmem:[#allocation4 + $0x84] sm:$0xf] }
  0xba   :  { %1113 = vmatpush.bf16.msra.mxu3 %v1856_v28  ;;  %1100 = vmatpush.bf16.msra.mxu2 %v1792_v31  ;;  %v1801_v28 = vld [vmem:[#allocation4 + $0x68] sm:$0xf0]  ;;  %v2217_v31 = vld [vmem:[#allocation4 + $0x194] sm:$0xf0] }
  0xbb   :  { %1139 = vmatpush.bf16.msrb.mxu1 %v1984_v34  ;;  %1126 = vmatpush.bf16.msrb.mxu0 %v1920_v36  ;;  %v1804_v29 = vor.u32 %v2178_v27, %v1801_v28  ;;  %v1952_v32 = vor.u32 %v2217_v31, %v1951_v30  ;;  %v1849_v34 = vld [vmem:[#allocation4 + $0xc8] sm:$0xf0]  ;;  %v1895_v36 = vld [vmem:[#allocation4 + $0x120] sm:$0xf]  ;;  %v2168_v28 = vld [vmem:[#allocation4 + $0x14] sm:$0xf] }
  0xbc   :  { %v1852_v35 = vor.u32 %v2190_v33, %v1849_v34  ;;  %v1896_v38 = vor.u32 %v2203_v37, %v1895_v36  ;;  %v2208_v31 = vld [vmem:[#allocation4 + $0x154] sm:$0xf]  ;;  %v2507_v36 = vld [vmem:[%s2591_s4] sm:$0xf] }
  0xbd   :  { %v2220_v34 = vld [vmem:[#allocation4 + $0x1b4] sm:$0xf] }
  0xbe   :  { %1114 = vmatpush.bf16.msra.mxu3 %v1848_v40  ;;  %1101 = vmatpush.bf16.msra.mxu2 %v1784_v42  ;;  %v1793_v40 = vld [vmem:[#allocation4 + $0x58] sm:$0xf0]  ;;  %v1943_v42 = vld [vmem:[#allocation4 + $0x180] sm:$0xf] }
  0xbf   :  { %1140 = vmatpush.bf16.msrb.mxu1 %v1976_v46  ;;  %1127 = vmatpush.bf16.msrb.mxu0 %v1912_v47  ;;  %v1796_v41 = vor.u32 %v2176_v39, %v1793_v40  ;;  %v1944_v44 = vor.u32 %v2215_v43, %v1943_v42  ;;  %v1841_v46 = vld [vmem:[#allocation4 + $0xb8] sm:$0xf0]  ;;  %v2228_v47 = vld [vmem:[#allocation4 + $0x1f4] sm:$0xf]  ;;  %v1753_v39 = vld [vmem:[#allocation4 + $0x8] sm:$0xf0] }
  0xc0   :  { %656 = vmatmul.bf16.vlgmr.msrb.gmra.mxu2 %v2490_v0  ;;  %682 = vmatmul.bf16.vlgmr.msra.gmra.mxu0 %v2490_v0  ;;  %v1751_v0 = vld [vmem:[#allocation4] sm:$0xf]  ;;  %v1844_v48 = vor.u32 %v2188_v45, %v1841_v46  ;;  %v2206_v40 = vld [vmem:[#allocation4 + $0x144] sm:$0xf]  ;;  %v1913_v42 = vld [vmem:[#allocation4 + $0x148] sm:$0xf0] }
  0xc1   :  { %669 = vmatmul.bf16.vlgmr.msrb.gmra.mxu3 %v2494_v5  ;;  %695 = vmatmul.bf16.vlgmr.msra.gmra.mxu1 %v2494_v5  ;;  %v1816_v5 = vor.u32 %v2183_v6, %v1815_v3  ;;  %v1752_v10 = vor.u32 %v2167_v7, %v1751_v0  ;;  %v2172_v6 = vld [vmem:[#allocation4 + $0x34] sm:$0xf]  ;;  %v1777_v0 = vld [vmem:[#allocation4 + $0x38] sm:$0xf0]  ;;  %v1916_v43 = vor.u32 %v2206_v40, %v1913_v42  ;;  %v1961_v45 = vld [vmem:[#allocation4 + $0x1a8] sm:$0xf0] }
  0xc2   :  { %1115 = vmatpush.bf16.msra.mxu3 %v1840_v50  ;;  %1102 = vmatpush.bf16.msra.mxu2 %v1776_v52  ;;  %v1887_v50 = vld [vmem:[#allocation4 + $0x110] sm:$0xf]  ;;  %v2004_v52 = vor.u32 %v2228_v47, %v2001_v49  ;;  %v2212_v7 = vld [vmem:[#allocation4 + $0x174] sm:$0xf]  ;;  %v1780_v8 = vor.u32 %v2172_v6, %v1777_v0  ;;  %v269_v46 = vperm.slane %v2507_v36, 1  ;;  %v2234_v42 = vld [vmem:[%s2594_s7 + $0x20] sm:$0xff] }
  0xc3   :  { %1141 = vmatpush.bf16.msrb.mxu1 %v1968_v56  ;;  %1128 = vmatpush.bf16.msrb.mxu0 %v1904_v26  ;;  %v1888_v53 = vor.u32 %v2201_v51, %v1887_v50  ;;  %v1788_v56 = vor.u32 %v2174_v54, %v1785_v55  ;;  %v1977_v26 = vld [vmem:[#allocation4 + $0x1c8] sm:$0xf0]  ;;  %v1905_v49 = vld [vmem:[#allocation4 + $0x138] sm:$0xf0]  ;;  %v2216_v51 = vld [vmem:[#allocation4 + $0x194] sm:$0xf] }
  0xc4   :  { %v1980_v27 = vor.u32 %v2222_v24, %v1977_v26 }
  0xc6   :  { %1116 = vmatpush.bf16.msra.mxu3 %v1832_v57  ;;  %1103 = vmatpush.bf16.msra.mxu2 %v1768_v60  ;;  %v2186_v57 = vld [vmem:[#allocation4 + $0xa4] sm:$0xf] }
  0xc7   :  { %1142 = vmatpush.bf16.msrb.mxu1 %v1960_v20  ;;  %1129 = vmatpush.bf16.msrb.mxu0 %v1896_v38  ;;  %v2226_v60 = vld [vmem:[#allocation4 + $0x1e4] sm:$0xf]  ;;  %v1836_v61 = vor.u32 %v2186_v57, %v1833_v59  ;;  %v1929_v20 = vld [vmem:[#allocation4 + $0x168] sm:$0xf0] }
  0xc8   :  { %v1996_v3 = vor.u32 %v2226_v60, %v1993_v62  ;;  %v1932_v21 = vor.u32 %v2210_v18, %v1929_v20  ;;  %v2166_v38 = vld [vmem:[#allocation4 + $0x4] sm:$0xf] }
  0xc9   :  { %v2214_v60 = vld [vmem:[#allocation4 + $0x184] sm:$0xf] }
  0xca   :  { %1117 = vmatpush.bf16.msra.mxu3 %v1824_v2  ;;  %1104 = vmatpush.bf16.msra.mxu2 %v1760_v4  ;;  %v2199_v2 = vld [vmem:[#allocation4 + $0x104] sm:$0xf0] }
  0xcb   :  { %1143 = vmatpush.bf16.msrb.mxu1 %v1952_v32  ;;  %1130 = vmatpush.bf16.msrb.mxu0 %v1888_v53  ;;  %v1880_v4 = vor.u32 %v2199_v2, %v1879_v1  ;;  %v1921_v32 = vld [vmem:[#allocation4 + $0x158] sm:$0xf0]  ;;  %v2202_v53 = vld [vmem:[#allocation4 + $0x124] sm:$0xf]  ;;  %v268_v2 = vperm.slane %v2507_v36, 0 }
  0xcc   :  { %v1924_v33 = vor.u32 %v2208_v31, %v1921_v32 }
  0xce   :  { %1118 = vmatpush.bf16.msra.mxu3 %v1816_v5  ;;  %1105 = vmatpush.bf16.msra.mxu2 %v1752_v10  ;;  %v1940_v5 = vor.u32 %v2212_v7, %v1937_v9  ;;  %v2184_v10 = vld [vmem:[#allocation4 + $0x94] sm:$0xf] }
  0xcf   :  { %1144 = vmatpush.bf16.msrb.mxu1 %v1944_v44  ;;  %1131 = vmatpush.bf16.msrb.mxu0 %v1880_v4  ;;  %v2218_v44 = vld [vmem:[#allocation4 + $0x1a4] sm:$0xf]  ;;  %v1889_v4 = vld [vmem:[#allocation4 + $0x118] sm:$0xf0] }
  0xd0   :  { %v1964_v47 = vor.u32 %v2218_v44, %v1961_v45  ;;  %v2245_v44 = vld [vmem:[%s2594_s7 + $0x78] sm:$0xff]  ;;  %v2232_v45 = vld [vmem:[%s2594_s7 + $0x10] sm:$0xff] }
  0xd2   :  { %1163 = vmatpush.bf16.msrb.mxu3 %v1876_v11  ;;  %1150 = vmatpush.bf16.msrb.mxu2 %v1812_v17  ;;  %v1825_v11 = vld [vmem:[#allocation4 + $0x98] sm:$0xf0]  ;;  %v1769_v17 = vld [vmem:[#allocation4 + $0x28] sm:$0xf0] }
  0xd3   :  { %1189 = vmatpush.bf16.msra.mxu1 %v2004_v52  ;;  %v1828_v13 = vor.u32 %v2184_v10, %v1825_v11  ;;  %1176 = vmatpush.bf16.msra.mxu0 %v1940_v5  ;;  %v1772_v19 = vor.u32 %v2170_v16, %v1769_v17  ;;  %v1953_v52 = vld [vmem:[#allocation4 + $0x198] sm:$0xf0] }
  0xd4   :  { %v1956_v55 = vor.u32 %v2216_v51, %v1953_v52  ;;  %v2241_v51 = vld [vmem:[%s2594_s7 + $0x58] sm:$0xff]  ;;  %v2240_v52 = vld [vmem:[%s2594_s7 + $0x50] sm:$0xff] }
  0xd6   :  { %1164 = vmatpush.bf16.msrb.mxu3 %v1868_v14  ;;  %1151 = vmatpush.bf16.msrb.mxu2 %v1804_v29  ;;  %v1985_v14 = vld [vmem:[#allocation4 + $0x1d8] sm:$0xf0] }
  0xd7   :  { %1190 = vmatpush.bf16.msra.mxu1 %v1996_v3  ;;  %v1988_v15 = vor.u32 %v2224_v12, %v1985_v14  ;;  %1177 = vmatpush.bf16.msra.mxu0 %v1932_v21  ;;  %v1761_v29 = vld [vmem:[#allocation4 + $0x18] sm:$0xf0]  ;;  %v2200_v3 = vld [vmem:[#allocation4 + $0x114] sm:$0xf]  ;;  %v2198_v14 = vld [vmem:[#allocation4 + $0x104] sm:$0xf] }
  0xd8   :  { %v1764_v30 = vor.u32 %v2168_v28, %v1761_v29 }
  0xda   :  { %1165 = vmatpush.bf16.msrb.mxu3 %v1860_v23  ;;  %1152 = vmatpush.bf16.msrb.mxu2 %v1796_v41  ;;  %v1817_v23 = vld [vmem:[#allocation4 + $0x88] sm:$0xf0]  ;;  %v1756_v41 = vor.u32 %v2166_v38, %v1753_v39 }
  0xdb   :  { %1191 = vmatpush.bf16.msra.mxu1 %v1988_v15  ;;  %v1820_v25 = vor.u32 %v2182_v22, %v1817_v23  ;;  %1178 = vmatpush.bf16.msra.mxu0 %v1924_v33  ;;  %v1881_v15 = vld [vmem:[#allocation4 + $0x108] sm:$0xf0]  ;;  %v2237_v22 = vld [vmem:[%s2594_s7 + $0x38] sm:$0xff] }
  0xdc   :  { %v1884_v16 = vor.u32 %v2198_v14, %v1881_v15 }
  0xde   :  { %1166 = vmatpush.bf16.msrb.mxu3 %v1852_v35  ;;  %1153 = vmatpush.bf16.msrb.mxu2 %v1788_v56  ;;  %v1969_v35 = vld [vmem:[#allocation4 + $0x1b8] sm:$0xf0]  ;;  %v1897_v56 = vld [vmem:[#allocation4 + $0x128] sm:$0xf0] }
  0xdf   :  { %1192 = vmatpush.bf16.msra.mxu1 %v1980_v27  ;;  %v1972_v37 = vor.u32 %v2220_v34, %v1969_v35  ;;  %1179 = vmatpush.bf16.msra.mxu0 %v1916_v43  ;;  %v1900_v62 = vor.u32 %v2202_v53, %v1897_v56  ;;  %v270_v27 = vperm.slane %v2507_v36, 2  ;;  %v2233_v43 = vld [vmem:[%s2594_s7 + $0x18] sm:$0xff] }
  0xe2   :  { %1167 = vmatpush.bf16.msrb.mxu3 %v1844_v48  ;;  %1154 = vmatpush.bf16.msrb.mxu2 %v1780_v8  ;;  %v2204_v48 = vld [vmem:[#allocation4 + $0x134] sm:$0xf]  ;;  %v1892_v8 = vor.u32 %v2200_v3, %v1889_v4 }
  0xe3   :  { %1193 = vmatpush.bf16.msra.mxu1 %v1972_v37  ;;  %v1908_v50 = vor.u32 %v2204_v48, %v1905_v49  ;;  %v2243_v48 = vld [vmem:[%s2594_s7 + $0x68] sm:$0xff]  ;;  %v2230_v49 = vld [vmem:[%s2594_s7] sm:$0xff] }
  0xe5   :  { %1180 = vmatpush.bf16.msra.mxu0 %v1908_v50  ;;  %v2242_v50 = vld [vmem:[%s2594_s7 + $0x60] sm:$0xff] }
  0xe6   :  { %1168 = vmatpush.bf16.msrb.mxu3 %v1836_v61  ;;  %1155 = vmatpush.bf16.msrb.mxu2 %v1772_v19  ;;  %v1945_v61 = vld [vmem:[#allocation4 + $0x188] sm:$0xf0]  ;;  %v271_v19 = vperm.slane %v2507_v36, 3  ;;  %v2236_v36 = vld [vmem:[%s2594_s7 + $0x30] sm:$0xff] }
  0xe7   :  { %1194 = vmatpush.bf16.msra.mxu1 %v1964_v47  ;;  %v1948_v6 = vor.u32 %v2214_v60, %v1945_v61  ;;  %v2231_v47 = vld [vmem:[%s2594_s7 + $0x8] sm:$0xff] }
  0xe9   :  { %1181 = vmatpush.bf16.msra.mxu0 %v1900_v62 }
  0xea   :  { %1169 = vmatpush.bf16.msrb.mxu3 %v1828_v13  ;;  %1156 = vmatpush.bf16.msrb.mxu2 %v1764_v30 }
  0xeb   :  { %1195 = vmatpush.bf16.msra.mxu1 %v1956_v55  ;;  %v772_v55 = vld [vmem:[%s2593_s6] sm:$0x3] }
  0xed   :  { %1182 = vmatpush.bf16.msra.mxu0 %v1892_v8 }
  0xee   :  { %1170 = vmatpush.bf16.msrb.mxu3 %v1820_v25  ;;  %1157 = vmatpush.bf16.msrb.mxu2 %v1756_v41  ;;  %v2235_v41 = vld [vmem:[%s2594_s7 + $0x28] sm:$0xff] }
  0xef   :  { %1196 = vmatpush.bf16.msra.mxu1 %v1948_v6 }
  0xf1   :  { %1183 = vmatpush.bf16.msra.mxu0 %v1884_v16 }
 0x12d   :  { %v631_v54 = vpop.f32.mrf.mxu0 }
 0x12e   :  { %v632_v57 = vadd.f32 %v631_v54, %v269_v46  ;;  %v644_v59 = vpop.f32.mrf.mxu1  ;;  %v2244_v46 = vld [vmem:[%s2594_s7 + $0x70] sm:$0xff]  ;;  %v2239_v54 = vld [vmem:[%s2594_s7 + $0x48] sm:$0xff] }
 0x130   :  { %v645_v1 = vadd.f32 %v644_v59, %v632_v57  ;;  %v774_v57 = vperm.slane %v772_v55, 0  ;;  %v2238_v59 = vld [vmem:[%s2594_s7 + $0x40] sm:$0xff] }
 0x132   :  { %v701_v0 = vmax.f32 %v645_v1, 0.0 }
 0x133   :  { %v605_v7 = vpop.f32.mrf.mxu2 }
 0x134   :  { %v705_v9 = vpack.c.bf16 %v701_v0, %v701_v0  ;;  %v606_v5 = vadd.f32 %v605_v7, %v268_v2  ;;  %v618_v10 = vpop.f32.mrf.mxu3 }
 0x135   :  { %v633_v11 = vpop.f32.mrf.mxu0 }
 0x136   :  { %v619_v12 = vadd.f32 %v618_v10, %v606_v5  ;;  %v646_v13 = vpop.f32.mrf.mxu1  ;;  %1119 = vmatmul.bf16.vlgmr.msra.gmra.mxu3 %v705_v9  ;;  %v775_v10 = vperm.slane %v772_v55, 1 }
 0x137   :  { %1353 = vmatpush.bf16.msra.mxu3 %v2245_v44 }
 0x138   :  { %v700_v17 = vmax.f32 %v619_v12, 0.0 }
 0x13a   :  { %v704_v18 = vpack.c.bf16 %v700_v17, %v700_v17 }
 0x13b   :  { %v607_v20 = vpop.f32.mrf.mxu2  ;;  %1354 = vmatpush.bf16.msra.mxu3 %v2244_v46 }
 0x13c   :  { %v620_v21 = vpop.f32.mrf.mxu3  ;;  %1106 = vmatmul.bf16.vlgmr.msra.gmra.mxu2 %v704_v18 }
 0x13d   :  { %v683_v23 = vpop.f32.mrf.mxu0  ;;  %1340 = vmatpush.bf16.msra.mxu2 %v2237_v22 }
 0x13e   :  { %v684_v24 = vadd.f32 %v683_v23, %v271_v19  ;;  %v696_v25 = vpop.f32.mrf.mxu1 }
 0x13f   :  { %1355 = vmatpush.bf16.msra.mxu3 %v2243_v48 }
 0x140   :  { %v697_v26 = vadd.f32 %v696_v25, %v684_v24 }
 0x141   :  { %1341 = vmatpush.bf16.msra.mxu2 %v2236_v36 }
 0x142   :  { %v703_v28 = vmax.f32 %v697_v26, 0.0  ;;  %v2248_v26 = vld [vmem:[%s2596_s9 + $0x10] sm:$0xff] }
 0x143   :  { %v657_v29 = vpop.f32.mrf.mxu2  ;;  %1356 = vmatpush.bf16.msra.mxu3 %v2242_v50 }
 0x144   :  { %v707_v30 = vpack.c.bf16 %v703_v28, %v703_v28  ;;  %v658_v31 = vadd.f32 %v657_v29, %v270_v27  ;;  %v670_v32 = vpop.f32.mrf.mxu3  ;;  %v2247_v27 = vld [vmem:[%s2596_s9 + $0x8] sm:$0xff] }
 0x145   :  { %v685_v33 = vpop.f32.mrf.mxu0  ;;  %1342 = vmatpush.bf16.msra.mxu2 %v2235_v41 }
 0x146   :  { %v671_v34 = vadd.f32 %v670_v32, %v658_v31  ;;  %v698_v35 = vpop.f32.mrf.mxu1  ;;  %1145 = vmatmul.bf16.vlgmr.msrb.gmra.mxu1 %v707_v30  ;;  %1171 = vmatmul.bf16.vlgmr.msrb.gmra.mxu3 %v705_v9 }
 0x147   :  { %1357 = vmatpush.bf16.msra.mxu3 %v2241_v51 }
 0x148   :  { %v702_v37 = vmax.f32 %v671_v34, 0.0 }
 0x149   :  { %1343 = vmatpush.bf16.msra.mxu2 %v2234_v42 }
 0x14a   :  { %v706_v38 = vpack.c.bf16 %v702_v37, %v702_v37 }
 0x14b   :  { %v659_v39 = vpop.f32.mrf.mxu2  ;;  %1358 = vmatpush.bf16.msra.mxu3 %v2240_v52 }
 0x14c   :  { %v672_v40 = vpop.f32.mrf.mxu3  ;;  %1132 = vmatmul.bf16.vlgmr.msrb.gmra.mxu0 %v706_v38  ;;  %1158 = vmatmul.bf16.vlgmr.msrb.gmra.mxu2 %v704_v18 }
 0x14d   :  { %1344 = vmatpush.bf16.msra.mxu2 %v2233_v43 }
 0x14f   :  { %1359 = vmatpush.bf16.msra.mxu3 %v2239_v54 }
 0x151   :  { %1345 = vmatpush.bf16.msra.mxu2 %v2232_v45 }
 0x153   :  { %1360 = vmatpush.bf16.msra.mxu3 %v2238_v59 }
 0x155   :  { %1346 = vmatpush.bf16.msra.mxu2 %v2231_v47 }
 0x156   :  { %1197 = vmatmul.bf16.vlgmr.msra.gmra.mxu1 %v707_v30  ;;  %v2256_v30 = vld [vmem:[%s2595_s8] ss:$0 sm:$0xff] }
 0x159   :  { %1347 = vmatpush.bf16.msra.mxu2 %v2230_v49 }
 0x15c   :  { %1184 = vmatmul.bf16.vlgmr.msra.gmra.mxu0 %v706_v38  ;;  %v2257_v38 = vld [vmem:[%s2597_s10] ss:$0 sm:$0xff] }
 0x1b9   :  { %v1120_v53 = vpop.f32.mrf.mxu3 }
 0x1bf   :  { %v1107_v56 = vpop.f32.mrf.mxu2 }
 0x1c0   :  { %v1108_v62 = vadd.f32 %v1107_v56, %v774_v57 }
 0x1c1   :  { %v1122_v60 = vpop.f32.mrf.mxu3 }
 0x1c2   :  { %v1121_v2 = vadd.f32 %v1120_v53, %v1108_v62 }
 0x1c3   :  { %v1146_v61 = vpop.f32.mrf.mxu1 }
 0x1c7   :  { %v1109_v1 = vpop.f32.mrf.mxu2 }
 0x1c9   :  { %v1133_v3 = vpop.f32.mrf.mxu0  ;;  %v1172_v4 = vpop.f32.mrf.mxu3 }
 0x1ca   :  { %v1134_v6 = vadd.f32 %v1133_v3, %v1121_v2 }
 0x1cb   :  { %v1148_v0 = vpop.f32.mrf.mxu1 }
 0x1cc   :  { %v1147_v7 = vadd.f32 %v1146_v61, %v1134_v6 }
 0x1ce   :  { %v1202_v8 = vmax.f32 %v1147_v7, 0.0 }
 0x1cf   :  { %v1159_v9 = vpop.f32.mrf.mxu2 }
 0x1d0   :  { %v1204_v5 = vadd.f32 %v1202_v8, %v2484_v58  ;;  %v1160_v15 = vadd.f32 %v1159_v9, %v775_v10  ;;  %v2249_v58 = vld [vmem:[%s2596_s9 + $0x18] sm:$0xff] }
 0x1d1   :  { %v1135_v11 = vpop.f32.mrf.mxu0  ;;  %v1174_v12 = vpop.f32.mrf.mxu3  ;;  %1412 = vmatpush.bf16.msrb.mxu0 %v2249_v58 }
 0x1d2   :  { %v1206_v13 = vpack.c.bf16 %v1204_v5, %v1204_v5  ;;  %v1173_v17 = vadd.f32 %v1172_v4, %v1160_v15 }
 0x1d3   :  { %v1198_v14 = vpop.f32.mrf.mxu1 }
 0x1d4   :  { %1348 = vmatmul.bf16.vlgmr.msra.gmra.mxu2 %v1206_v13 }
 0x1d5   :  { %1413 = vmatpush.bf16.msrb.mxu0 %v2248_v26 }
 0x1d7   :  { %v1161_v16 = vpop.f32.mrf.mxu2 }
 0x1d9   :  { %v1185_v18 = vpop.f32.mrf.mxu0  ;;  %1414 = vmatpush.bf16.msrb.mxu0 %v2247_v27 }
 0x1da   :  { %v1186_v19 = vadd.f32 %v1185_v18, %v1173_v17 }
 0x1db   :  { %v1200_v20 = vpop.f32.mrf.mxu1 }
 0x1dc   :  { %v1199_v21 = vadd.f32 %v1198_v14, %v1186_v19 }
 0x1de   :  { %v1203_v22 = vmax.f32 %v1199_v21, 0.0 }
 0x1e0   :  { %v1205_v23 = vadd.f32 %v1203_v22, %v2486_v63  ;;  %v2246_v63 = vld [vmem:[%s2596_s9] sm:$0xff] }
 0x1e1   :  { %v1187_v24 = vpop.f32.mrf.mxu0  ;;  %1415 = vmatpush.bf16.msrb.mxu0 %v2246_v63 }
 0x1e2   :  { %v1207_v25 = vpack.c.bf16 %v1205_v23, %v1205_v23 }
 0x1e4   :  { %1361 = vmatmul.bf16.vlgmr.msra.gmra.mxu3 %v1207_v25 }
 0x257   :  { %v1349_v28 = vpop.f32.mrf.mxu2 }
 0x258   :  { %v1350_v31 = vadd.f32 %v2256_v30, %v1349_v28 }
 0x25f   :  { %v1351_v29 = vpop.f32.mrf.mxu2 }
 0x267   :  { %v1362_v32 = vpop.f32.mrf.mxu3 }
 0x268   :  { %v1363_v33 = vadd.f32 %v1362_v32, %v1350_v31 }
 0x26a   :  { %v1366_v34 = vmax.f32 %v1363_v33, 0.0 }
 0x26c   :  { %v1367_v35 = vpack.c.bf16 %v1366_v34, %v1366_v34 }
 0x26e   :  { %2085 = vmatmul.msk.bf16.vlgmr.msrb.gmra.mxu0 %vm1404_vm0, %v1367_v35 }
 0x26f   :  { %v1364_v37 = vpop.f32.mrf.mxu3 }
 0x2eb   :  { %v1417_v39 = vpop.f32.mrf.mxu0 }
 0x2ec   :  { %v1418_v40 = vadd.f32 %v2257_v38, %v1417_v39 }
 0x2ee   :  { %1422 = vst.msk [vmem:[%s2598_s11] sm:$0xff] %vm1421_vm1, %v1418_v40 }
 0x2f3   :  { %v1419_v36 = vpop.f32.mrf.mxu0 }
 0x2f4   :  { %1427 = vsyncpa [#allocation3], 1 }
 0x2f5   :  { %1428 = vsyncpa [#allocation5], 1 }

</bundles_post_ra>
